<compile_context>
chip_gen: v6e
topology: v6e:2x2x1
jax: 0.10.0
libtpu: 0.0.40
codegen_flags: <defaults>
</compile_context>

<pallas_src>
import functools

import jax
import jax.numpy as jnp
from jax.experimental import pallas as pl
from jax.experimental.pallas import tpu as pltpu


def _soft_ce_kernel(x_ref, t_ref, out_ref, *, ignore_index, C, S, S_tile, ragged):
    # x_ref: (1, C, S_tile, 128) logits (native dtype), spatial on (sublane,lane).
    # t_ref: (1, 1, S_tile, 128) int32 targets.
    # out_ref: (1, 2, 1, 128) f32 -- [nll_partial, smooth_partial] lane sums.
    j = pl.program_id(1)

    acc_nll = jnp.zeros((1, 128), jnp.float32)
    acc_sm = jnp.zeros((1, 128), jnp.float32)

    # Statically-unrolled loop over 8-sublane chunks; the last chunk may be
    # short when S_tile is the full (non-multiple-of-8) spatial extent.
    off = 0
    while off < S_tile:
        cs = min(8, S_tile - off)
        xc = x_ref[0, :, off:off + cs, :].astype(jnp.float32)   # (C, cs, 128)
        tc = t_ref[0, 0, off:off + cs, :]                       # (cs, 128)

        # log-sum-exp over the class axis: plain VPU max/add across C planes.
        m = jnp.max(xc, axis=0)                                  # (cs, 128)
        lse = jnp.log(jnp.sum(jnp.exp(xc - m), axis=0)) + m      # (cs, 128)
        sum_x = jnp.sum(xc, axis=0)                              # (cs, 128)

        # gather x[target] via one-hot compare (no dynamic gather on TPU).
        # Ignored pixels are masked below, so no "safe target" select needed.
        cls = jax.lax.broadcasted_iota(jnp.int32, xc.shape, 0)   # (C, cs, 128)
        x_g = jnp.sum(jnp.where(cls == tc, xc, 0.0), axis=0)     # (cs, 128)

        keep = tc != ignore_index                                # (cs, 128)
        if ragged:  # only the ragged-tiling case pays for the position mask
            pos = (j * S_tile + off
                   + jax.lax.broadcasted_iota(jnp.int32, (cs, 128), 0))
            keep = jnp.logical_and(keep, pos < S)

        # nll = lse - x[target] ; smooth = C*lse - sum_c(x)
        nll_c = jnp.where(keep, lse - x_g, 0.0)
        sm_c = jnp.where(keep, C * lse - sum_x, 0.0)

        # mask BEFORE any cross-sublane fold (OOB / ignored lanes hold garbage)
        acc_nll = acc_nll + jnp.sum(nll_c, axis=0, keepdims=True)
        acc_sm = acc_sm + jnp.sum(sm_c, axis=0, keepdims=True)
        off += cs

    out_ref[0, 0, :, :] = acc_nll
    out_ref[0, 1, :, :] = acc_sm


def soft_cross_entropy_loss(x_nchw, target_nhw, *, smooth_factor=0.0,
                            ignore_index=-100, reduction="mean"):
    N, C, H, W = x_nchw.shape
    HW = H * W
    M = N * HW  # PyTorch .mean() divides by ALL elements, incl. ignored ones

    ii = jnp.iinfo(jnp.int32).min if ignore_index is None else int(ignore_index)

    x = x_nchw.reshape(N, C, HW)                       # free contiguous merge
    t = target_nhw.reshape(N, 1, HW).astype(jnp.int32)

    # Lanes must be 128-dense.  Rare fallback: pad the spatial remainder and
    # mark the padded pixels ignored (they contribute 0; divisor uses real M).
    # TODO(synk): this fallback costs one extra HBM pass; the common
    # segmentation case (H*W % 128 == 0) pays nothing.
    HW_pad = ((HW + 127) // 128) * 128
    if HW_pad != HW:
        x = jnp.pad(x, ((0, 0), (0, 0), (0, HW_pad - HW)))
        t = jnp.pad(t, ((0, 0), (0, 0), (0, HW_pad - HW)), constant_values=ii)

    S = HW_pad // 128
    x = x.reshape(N, C, S, 128)       # free reshape: spatial -> (sublane, lane)
    t = t.reshape(N, 1, S, 128)

    # Spatial tile: ~512 KiB of logits per block (memory-bound roofline while
    # keeping double-buffered VMEM tiny on all of v5e/v6e/v7x), multiple of 8
    # sublanes, capped so the unrolled chunk loop stays short.
    itemsize = jnp.dtype(x.dtype).itemsize
    S_tile = (512 * 1024 // max(1, C * 128 * itemsize)) // 8 * 8
    S_tile = max(8, min(S_tile, 512))
    if S_tile >= S:
        S_tile = S                    # full extent (legal for any S)

    # Megacore balance (v7x has 2 TCs): ensure >= 4 blocks when spatial allows.
    min_blocks = 4
    J = pl.cdiv(S, S_tile)
    if N * J < min_blocks and S >= 8:
        desired_j = min(-(-min_blocks // N), S // 8)
        if desired_j > J:
            S_tile = max(8, ((S // desired_j) // 8) * 8)
            J = pl.cdiv(S, S_tile)
    ragged = (S % S_tile) != 0

    out_map = lambda n, j: (n * J + j, 0, 0, 0)

    parts = pl.pallas_call(
        functools.partial(_soft_ce_kernel, ignore_index=ii, C=C, S=S,
                          S_tile=S_tile, ragged=ragged),
        out_shape=jax.ShapeDtypeStruct((N * J, 2, 1, 128), jnp.float32),
        grid_spec=pltpu.PrefetchScalarGridSpec(
            num_scalar_prefetch=0,
            grid=(N, J),
            in_specs=[pl.BlockSpec((1, C, S_tile, 128), lambda n, j: (n, 0, j, 0)),
                      pl.BlockSpec((1, 1, S_tile, 128), lambda n, j: (n, 0, j, 0))],
            out_specs=pl.BlockSpec((1, 2, 1, 128), out_map)),
        compiler_params=pltpu.CompilerParams(
            dimension_semantics=("parallel", "parallel")),
    )(x, t)

    nll_sum = jnp.sum(parts[:, 0])
    sm_sum = jnp.sum(parts[:, 1])

    if reduction == "mean":
        nll, sm = nll_sum / M, sm_sum / M
    elif reduction == "sum":
        nll, sm = nll_sum, sm_sum
    else:
        raise ValueError(f"unsupported reduction: {reduction}")

    eps_i = smooth_factor / C
    return (1.0 - smooth_factor) * nll + eps_i * sm


def _reference_loss(x_nchw, target_nhw, *, smooth_factor, ignore_index):
    # pure-JAX reference mirroring the PyTorch code path (weight=None)
    C = x_nchw.shape[1]
    lp = jax.nn.log_softmax(x_nchw.astype(jnp.float32), axis=1)
    t = target_nhw.astype(jnp.int32)
    pad = t == ignore_index
    t_safe = jnp.where(pad, 0, t)
    nll = -jnp.take_along_axis(lp, t_safe[:, None], axis=1)[:, 0]
    sm = -jnp.sum(lp, axis=1)
    nll = jnp.where(pad, 0.0, nll)
    sm = jnp.where(pad, 0.0, sm)
    return (1.0 - smooth_factor) * nll.mean() + (smooth_factor / C) * sm.mean()


if __name__ == "__main__":
    key = jax.random.PRNGKey(0)
    kx, kt, kx2, kt2 = jax.random.split(key, 4)

    # Case 1: fast path (H*W is a multiple of 128).
    N, C, H, W = 2, 4, 16, 16
    x = jax.random.normal(kx, (N, C, H, W), dtype=jnp.float32)
    target = jax.random.randint(kt, (N, H, W), 0, C, dtype=jnp.int32)
    target = target.at[0, :2, :].set(-100)     # exercise ignore_index handling
    loss = soft_cross_entropy_loss(x, target, smooth_factor=0.1,
                                   ignore_index=-100, reduction="mean")
    loss = jax.block_until_ready(loss)
    ref = _reference_loss(x, target, smooth_factor=0.1, ignore_index=-100)
    assert jnp.allclose(loss, ref, atol=1e-5, rtol=1e-5), (loss, ref)

    # Case 2: padded fallback (H*W not a multiple of 128).
    N2, C2, H2, W2 = 1, 3, 10, 10
    x2 = jax.random.normal(kx2, (N2, C2, H2, W2), dtype=jnp.float32)
    t2 = jax.random.randint(kt2, (N2, H2, W2), 0, C2, dtype=jnp.int32)
    t2 = t2.at[0, 0, :3].set(-100)
    loss2 = soft_cross_entropy_loss(x2, t2, smooth_factor=0.05,
                                    ignore_index=-100, reduction="mean")
    loss2 = jax.block_until_ready(loss2)
    ref2 = _reference_loss(x2, t2, smooth_factor=0.05, ignore_index=-100)
    assert jnp.allclose(loss2, ref2, atol=1e-5, rtol=1e-5), (loss2, ref2)

    print("KERNEL_OK")
</pallas_src>

<mosaic_0001>
module attributes {stable_mosaic.version = 11 : i64} {
  func.func @_soft_ce_kernel(%arg0: i32, %arg1: i32, %arg2: memref<1x4x2x128xf32, #tpu.memory_space<vmem>>, %arg3: memref<1x1x2x128xi32, #tpu.memory_space<vmem>>, %arg4: memref<1x2x1x128xf32, #tpu.memory_space<vmem>>) attributes {dimension_semantics = [#tpu.dimension_semantics<parallel>, #tpu.dimension_semantics<parallel>], iteration_bounds = array<i64: 2, 1>, scalar_prefetch = 0 : i64, scratch_operands = 0 : i64, tpu.core_type = #tpu.core_type<tc>, window_params = [{transform_indices = @transform_0, window_bounds = array<i64: 1, 4, 2, 128>}, {transform_indices = @transform_1, window_bounds = array<i64: 1, 1, 2, 128>}, {transform_indices = @transform_2, window_bounds = array<i64: 1, 2, 1, 128>}]} {
    %cst = arith.constant 0.000000e+00 : f32
    %0 = vector.broadcast %cst : f32 to vector<1x128xf32>
    %cst_0 = arith.constant 0.000000e+00 : f32
    %1 = vector.broadcast %cst_0 : f32 to vector<1x128xf32>
    %c0 = arith.constant 0 : index
    %c0_1 = arith.constant 0 : index
    %c0_2 = arith.constant 0 : index
    %c0_3 = arith.constant 0 : index
    %2 = vector.load %arg2[%c0, %c0_1, %c0_2, %c0_3] : memref<1x4x2x128xf32, #tpu.memory_space<vmem>>, vector<1x4x2x128xf32>
    %3 = vector.shape_cast %2 : vector<1x4x2x128xf32> to vector<4x2x128xf32>
    %c0_4 = arith.constant 0 : index
    %c0_5 = arith.constant 0 : index
    %c0_6 = arith.constant 0 : index
    %c0_7 = arith.constant 0 : index
    %4 = vector.load %arg3[%c0_4, %c0_5, %c0_6, %c0_7] : memref<1x1x2x128xi32, #tpu.memory_space<vmem>>, vector<1x1x2x128xi32>
    %5 = vector.shape_cast %4 : vector<1x1x2x128xi32> to vector<2x128xi32>
    %cst_8 = arith.constant dense<0xFF800000> : vector<2x128xf32>
    %6 = vector.multi_reduction <maximumf>, %3, %cst_8 [0] : vector<4x2x128xf32> to vector<2x128xf32>
    %7 = vector.shape_cast %6 : vector<2x128xf32> to vector<1x2x128xf32>
    %8 = vector.broadcast %7 : vector<1x2x128xf32> to vector<4x2x128xf32>
    %9 = arith.subf %3, %8 : vector<4x2x128xf32>
    %10 = math.exp %9 : vector<4x2x128xf32>
    %cst_9 = arith.constant dense<0.000000e+00> : vector<2x128xf32>
    %11 = vector.multi_reduction <add>, %10, %cst_9 [0] : vector<4x2x128xf32> to vector<2x128xf32>
    %12 = math.log %11 : vector<2x128xf32>
    %13 = arith.addf %12, %6 : vector<2x128xf32>
    %cst_10 = arith.constant dense<0.000000e+00> : vector<2x128xf32>
    %14 = vector.multi_reduction <add>, %3, %cst_10 [0] : vector<4x2x128xf32> to vector<2x128xf32>
    %15 = tpu.iota {dimensions = array<i32: 0>} : vector<4x2x128xi32>
    %16 = vector.shape_cast %5 : vector<2x128xi32> to vector<1x2x128xi32>
    %17 = vector.broadcast %16 : vector<1x2x128xi32> to vector<4x2x128xi32>
    %18 = arith.cmpi eq, %15, %17 : vector<4x2x128xi32>
    %cst_11 = arith.constant 0.000000e+00 : f32
    %19 = vector.broadcast %cst_11 : f32 to vector<4x2x128xf32>
    %20 = arith.select %18, %3, %19 : vector<4x2x128xi1>, vector<4x2x128xf32>
    %cst_12 = arith.constant dense<0.000000e+00> : vector<2x128xf32>
    %21 = vector.multi_reduction <add>, %20, %cst_12 [0] : vector<4x2x128xf32> to vector<2x128xf32>
    %c-100_i32 = arith.constant -100 : i32
    %22 = vector.broadcast %c-100_i32 : i32 to vector<2x128xi32>
    %23 = arith.cmpi ne, %5, %22 : vector<2x128xi32>
    %24 = arith.subf %13, %21 : vector<2x128xf32>
    %cst_13 = arith.constant 0.000000e+00 : f32
    %25 = vector.broadcast %cst_13 : f32 to vector<2x128xf32>
    %26 = arith.select %23, %24, %25 : vector<2x128xi1>, vector<2x128xf32>
    %cst_14 = arith.constant 4.000000e+00 : f32
    %27 = vector.broadcast %cst_14 : f32 to vector<2x128xf32>
    %28 = arith.mulf %27, %13 : vector<2x128xf32>
    %29 = arith.subf %28, %14 : vector<2x128xf32>
    %cst_15 = arith.constant 0.000000e+00 : f32
    %30 = vector.broadcast %cst_15 : f32 to vector<2x128xf32>
    %31 = arith.select %23, %29, %30 : vector<2x128xi1>, vector<2x128xf32>
    %cst_16 = arith.constant dense<0.000000e+00> : vector<128xf32>
    %32 = vector.multi_reduction <add>, %26, %cst_16 [0] : vector<2x128xf32> to vector<128xf32>
    %33 = vector.shape_cast %32 : vector<128xf32> to vector<1x128xf32>
    %34 = arith.addf %0, %33 : vector<1x128xf32>
    %cst_17 = arith.constant dense<0.000000e+00> : vector<128xf32>
    %35 = vector.multi_reduction <add>, %31, %cst_17 [0] : vector<2x128xf32> to vector<128xf32>
    %36 = vector.shape_cast %35 : vector<128xf32> to vector<1x128xf32>
    %37 = arith.addf %1, %36 : vector<1x128xf32>
    %c0_18 = arith.constant 0 : index
    %c0_19 = arith.constant 0 : index
    %c0_20 = arith.constant 0 : index
    %c0_21 = arith.constant 0 : index
    %38 = vector.load %arg4[%c0_18, %c0_19, %c0_20, %c0_21] : memref<1x2x1x128xf32, #tpu.memory_space<vmem>>, vector<1x1x1x128xf32>
    %39 = vector.shape_cast %38 : vector<1x1x1x128xf32> to vector<1x128xf32>
    %40 = vector.shape_cast %34 : vector<1x128xf32> to vector<1x1x1x128xf32>
    tpu.vector_store %arg4[%c0_18, %c0_19, %c0_20, %c0_21], %40 {strides = array<i32>} : memref<1x2x1x128xf32, #tpu.memory_space<vmem>>, vector<1x1x1x128xf32>,
    %c0_22 = arith.constant 0 : index
    %c1 = arith.constant 1 : index
    %c0_23 = arith.constant 0 : index
    %c0_24 = arith.constant 0 : index
    %41 = vector.load %arg4[%c0_22, %c1, %c0_23, %c0_24] : memref<1x2x1x128xf32, #tpu.memory_space<vmem>>, vector<1x1x1x128xf32>
    %42 = vector.shape_cast %41 : vector<1x1x1x128xf32> to vector<1x128xf32>
    %43 = vector.shape_cast %37 : vector<1x128xf32> to vector<1x1x1x128xf32>
    tpu.vector_store %arg4[%c0_22, %c1, %c0_23, %c0_24], %43 {strides = array<i32>} : memref<1x2x1x128xf32, #tpu.memory_space<vmem>>, vector<1x1x1x128xf32>,
    return
  }
  func.func @transform_0(%arg0: i32, %arg1: i32) -> (i32, i32, i32, i32) {
    %c0_i32 = arith.constant 0 : i32
    %c0_i32_0 = arith.constant 0 : i32
    %c0_i32_1 = arith.constant 0 : i32
    return %arg0, %c0_i32, %arg1, %c0_i32_0 : i32, i32, i32, i32
  }
  func.func @transform_1(%arg0: i32, %arg1: i32) -> (i32, i32, i32, i32) {
    %c0_i32 = arith.constant 0 : i32
    %c0_i32_0 = arith.constant 0 : i32
    %c0_i32_1 = arith.constant 0 : i32
    return %arg0, %c0_i32, %arg1, %c0_i32_0 : i32, i32, i32, i32
  }
  func.func @transform_2(%arg0: i32, %arg1: i32) -> (i32, i32, i32, i32) {
    %c1_i32 = arith.constant 1 : i32
    %0 = arith.muli %arg0, %c1_i32 : i32
    %1 = arith.addi %0, %arg1 : i32
    %c0_i32 = arith.constant 0 : i32
    %c0_i32_0 = arith.constant 0 : i32
    %c0_i32_1 = arith.constant 0 : i32
    %c0_i32_2 = arith.constant 0 : i32
    return %1, %c0_i32, %c0_i32_0, %c0_i32_1 : i32, i32, i32, i32
  }
}

</mosaic_0001>

<bundles_post_ra>
// kernel: tpu_custom_call.1
= control target key start
LH: loop header
LB: loop body
LE: loop exit
PB: predicated region body
PF: predicated region fallthrough
CT: control target
= control target key end

     0   :  { %7 = vsyncpa [#allocation3], 0  ;;  %s892_s0 = inlined_call_operand.hbm [shape: f32[2,4,2,128], index: 0, kind: input, shape index: {}]   ;;  %s893_s1 = inlined_call_operand.hbm [shape: s32[2,1,2,128], index: 1, kind: input, shape index: {}]   ;;  %s894_s2 = inlined_call_operand.hbm [shape: f32[2,2,1,128], index: 2, kind: output, shape index: {}]  }
   0x1   :  { %9 = vsyncpa [#allocation3 + $0x1], 0 }
   0x2   :  { %10 = vsyncpa [#allocation6], 0 }
   0x3   :  { %12 = vsyncpa [#allocation6 + $0x1], 0 }
   0x4   :  { %13 = vsyncpa [#allocation4], 0 }
   0x5   :  { %15 = vsyncpa [#allocation4 + $0x1], 0  ;;  %s691_s9 = smov 0   ;;  %s693_s10 = smov 0  }
   0x6   :  { %s695_s11 = smov 0   ;;  %s697_s12 = smov 0  }
   0x7   :  { %s699_s13 = smov 0   ;;  %s701_s14 = smov 0  }
   0x8 LB: > { %s425_s15 = sadd.s32 4294967295, %s667_s14   ;;  %s426_s16 = sadd.s32 4294967294, %s667_s14   ;;  %s667_s14 = sphi %s701_s14, %s21_s14   ;;  %s663_s13 = sphi %s699_s13, %s905_s13   ;;  %s659_s12 = sphi %s697_s12, %s904_s12   ;;  %s655_s11 = sphi %s695_s11, %s903_s11   ;;  %s651_s10 = sphi %s693_s10, %s902_s10   ;;  %s647_s9 = sphi %s691_s9, %s901_s9  }
   0x9   : > { %s33_s17 = sadd.s32 1, %s663_s13  ;;  %s42_s18 = sadd.s32 1, %s655_s11 }
   0xa   : > { %p35_p0 = scmp.ge.s32.totalorder %s33_s17, 2  ;;  %p49_p1 = scmp.ne.s32.totalorder %s655_s11, %s651_s10 }
   0xb   : > { %p50_p2 = scmp.eq.s32.totalorder %s667_s14, 0  ;;  %p55_p3 = scmp.ne.s32.totalorder %s651_s10, %s647_s9 }
   0xc   : > { %s907_s17 = smov (%p35_p0, %s33_s17), 0  ;;  %p56_p5 = scmp.eq.s32.totalorder %s425_s15, 0 }
   0xd   : > { %p732_p4 = por %p50_p2, %p49_p1  ;;  %s37_s20 = ssub.s32 %s663_s13, %s907_s17 }
   0xe   : > { %p109_p6 = scmp.eq.s32.totalorder %s425_s15, 1  ;;  %p40_p7 = scmp.eq.s32.totalorder %s37_s20, 0 }
   0xf   : > { %p738_p8 = por %p56_p5, %p55_p3  ;;  %p115_p10 = scmp.eq.s32.totalorder %s426_s16, 1 }
  0x10   : > { %p742_p9 = por %p109_p6, %p49_p1  ;;  %p428_p12 = scmp.ge.s32.totalorder %s667_s14, 2 }
  0x11   : > { %s747_s23 = scalar_select %p40_p7, %s655_s11, %s42_s18  }
  0x12   : > { %p749_p11 = por %p115_p10, %p55_p3  ;;  %p463_p13 = scmp.lt.s32.totalorder %s667_s14, 2 }
  0x13   : > { %s756_s25 = sand.u32 1, %s655_s11   ;;  %s444_s27 = sshll.u32 %s663_s13, 7 }
  0x14   : > { %s429_s26 = sshll.u32 %s756_s25, 3  ;;  %s146_s30 = scalar_lea.hbm %s892_s0, %s444_s27 }
  0x15   : > { %s139_s3 = scalar_lea.vmem [#allocation2], %s429_s26  ;;  %p765_p0 = pnand %p463_p13, %p732_p4 }
  0x16   : > { %s147_s4 = sshll.u32 %s139_s3, 4  ;;  %p434_p1 = scmp.ge.s32.totalorder %s667_s14, 1  ;;  %s148_s4 = int_to_ptr.vmem [resolvable:$true] %s147_s4 }
  0x17   : > { %s136_s6 = scalar_lea.sflag [#allocation3], %s756_s25  ;;  %p529_p2 = pneg %p765_p0 }
  0x18   : > { %s540_s7 = scalar_lea.vmem %s148_s4, 128  ;;  %s669_s8 = smov [#allocation2]  }
  0x19   : > { %p541_p3 = scmp.ne.s32.totalorder %s148_s4, %s540_s7  ;;  %s545_s15 = sshll.u32 %s669_s8, 4  ;;  %s546_s15 = int_to_ptr.vmem [resolvable:$false] %s545_s15 }
  0x1a   : > { %s547_s16 = scalar_lea.vmem %s546_s15, 256  ;;  %p548_p4 = scmp.lt.s32.totalorder %s148_s4, %s546_s15 }
  0x1b   : > { %p543_p5 = pnand %p541_p3, %p529_p2  ;;  %p549_p7 = scmp.lt.s32.totalorder %s547_s16, %s540_s7 }
  0x1d   : > { %p544_p6 = pneg %p543_p5  ;;  %p550_p10 = por %p549_p7, %p548_p4 }
  0x1f   : > { %p551_p13 = pnand %p550_p10, %p544_p6 }
  0x21   : > { %554 = shalt.err (!%p551_p13)
}
  0x22   : > { %s670_s18 = smov 32   ;;  %s671_s19 = smov 2  }
  0x23   : > { %455 = dma.hbm_to_vmem [thread:$0]  (!%p765_p0), %s146_s30, 128, %s148_s4, %s136_s6, %s670_s18, %s670_s18, %s671_s19  }
  0x24   : > { %p174_p3 = scmp.lt.s32.totalorder %s667_s14, 3  ;;  %s432_s20 = sshll.u32 %s756_s25, 1 }
  0x25   : > { %s433_s26 = sshll.u32 %s663_s13, 5  ;;  %s161_s7 = scalar_lea.vmem [#allocation5], %s432_s20 }
  0x26   : > { %p783_p5 = pnand %p434_p1, %p174_p3  ;;  %s167_s3 = scalar_lea.hbm %s893_s1, %s433_s26 }
  0x27   : > { %s169_s8 = sshll.u32 %s161_s7, 4  ;;  %s158_s15 = scalar_lea.sflag [#allocation6], %s756_s25  ;;  %s170_s8 = int_to_ptr.vmem [resolvable:$true] %s169_s8 }
  0x28   : > { %s568_s16 = scalar_lea.vmem %s170_s8, 32  ;;  %s672_s30 = smov [#allocation5]  }
  0x29   : > { %p569_p6 = scmp.ne.s32.totalorder %s170_s8, %s568_s16  ;;  %s573_s4 = sshll.u32 %s672_s30, 4  ;;  %s574_s4 = int_to_ptr.vmem [resolvable:$false] %s573_s4 }
  0x2a   : > { %s575_s6 = scalar_lea.vmem %s574_s4, 64  ;;  %p576_p1 = scmp.lt.s32.totalorder %s170_s8, %s574_s4 }
  0x2b   : > { %p571_p4 = pnand %p569_p6, %p529_p2  ;;  %p577_p10 = scmp.lt.s32.totalorder %s575_s6, %s568_s16 }
  0x2d   : > { %p572_p7 = pneg %p571_p4  ;;  %p578_p13 = por %p577_p10, %p576_p1 }
  0x2f   : > { %p579_p3 = pnand %p578_p13, %p572_p7 }
  0x31   : > { %582 = shalt.err (!%p579_p3)
}
  0x32   : > { %458 = dma.hbm_to_vmem [thread:$0]  (!%p765_p0), %s167_s3, 32, %s170_s8, %s158_s15  }
  0x33   : > { %178 = sbr.rel (%p783_p5) target bundleno = 143 (0x8f), region = 28  ;;  %s799_s25 = sand.u32 (!%p783_p5), 1, %s651_s10  }
  0x34   : > { %s435_s18 = sshll.u32 (!%p783_p5), %s799_s25, 3  ;;  %s181_s19 = scalar_lea.sflag (!%p783_p5), [#allocation3], %s799_s25 }
  0x35   : > { %s184_s20 = scalar_lea.vmem (!%p783_p5), [#allocation2], %s435_s18 }
  0x38   : > { %634 = dma.done.wait (%p738_p8), %s181_s19, 128  }
  0x39   : > { %636 = vsyncadd (%p738_p8), %s181_s19, 4294967168  ;;  %s436_s5 = sshll.u32 %s799_s25, 1  ;;  %s190_s26 = scalar_lea.sflag [#allocation6], %s799_s25 }
  0x3a   : > { %s811_s27 = scalar_lea.vmem [#allocation5], %s436_s5 }
  0x3b   : > { %638 = dma.done.wait (%p738_p8), %s190_s26, 32  }
  0x3c   : > { %640 = vsyncadd (%p738_p8), %s190_s26, 4294967264  ;;  %vm225_vm0 = vcmask 1041408   ;;  %v220_v0 = vld [vmem:[%s184_s20] sm:$0x3]  ;;  %v221_v1 = vld [vmem:[%s184_s20 + $0x2] sm:$0x3] }
  0x3d   : > { %v222_v2 = vld [vmem:[%s184_s20 + $0x4] sm:$0x3]  ;;  %v223_v3 = vld [vmem:[%s184_s20 + $0x6] sm:$0x3]  ;;  %v226_v4 = vsel %vm225_vm0, %v220_v0, -inf  ;;  %v227_v5 = vsel %vm225_vm0, %v221_v1, -inf }
  0x3e   : > { %v228_v6 = vsel %vm225_vm0, %v222_v2, -inf  ;;  %v229_v7 = vsel %vm225_vm0, %v223_v3, -inf  ;;  %v230_v8 = vmax.f32 %v226_v4, %v227_v5  ;;  %v224_v25 = vld [vmem:[%s811_s27] sm:$0x3]  ;;  %v255_v36 = vsel %vm225_vm0, %v220_v0, 0.0  ;;  %s218_s21 = scalar_lea.vmem [#allocation7], %s436_s5 }
  0x3f   : > { %v231_v9 = vmax.f32 %v228_v6, %v229_v7  ;;  %vm262_vm1 = vcmp.eq.s32.totalorder %v224_v25, 0  ;;  %vm263_vm2 = vcmp.eq.s32.totalorder %v224_v25, 1  ;;  %vm264_vm3 = vcmp.eq.s32.totalorder %v224_v25, 2  ;;  %s317_s28 = sshll.u32 %s218_s21, 4  ;;  %s445_s29 = sshll.u32 %s659_s12, 5  ;;  %s839_s28 = int_to_ptr.vmem [resolvable:$true] %s317_s28 }
  0x40   : > { %v266_v31 = vsel %vm262_vm1, %v220_v0, 0.0  ;;  %v267_v32 = vsel %vm263_vm2, %v221_v1, 0.0  ;;  %v268_v35 = vsel %vm264_vm3, %v222_v2, 0.0  ;;  %vm265_vm4 = vcmp.eq.s32.totalorder %v224_v25, 3  ;;  %s844_s8 = scalar_lea.hbm %s894_s2, %s445_s29  ;;  %s303_s15 = scalar_lea.sflag [#allocation4], %s799_s25 }
  0x41   : > { %v232_v10 = vmax.f32 %v230_v8, %v231_v9  ;;  %v270_v33 = vsel %vm225_vm0, %v266_v31, 0.0  ;;  %v271_v34 = vsel %vm225_vm0, %v267_v32, 0.0  ;;  %v256_v37 = vsel %vm225_vm0, %v221_v1, 0.0  ;;  %s583_s16 = scalar_lea.vmem %s839_s28, 32  ;;  %s673_s12 = smov [#allocation7]  }
  0x42   : > { %v272_v38 = vadd.f32 %v271_v34, %v270_v33  ;;  %v273_v39 = vsel %vm225_vm0, %v268_v35, 0.0  ;;  %v269_v40 = vsel %vm265_vm4, %v223_v3, 0.0  ;;  %v257_v41 = vadd.f32 %v256_v37, %v255_v36  ;;  %p584_p8 = scmp.ne.s32.totalorder %s839_s28, %s583_s16  ;;  %s587_s30 = sshll.u32 %s673_s12, 4  ;;  %s588_s30 = int_to_ptr.vmem [resolvable:$false] %s587_s30 }
  0x43   : > { %v233_v11 = vsub.f32 %v220_v0, %v232_v10  ;;  %v234_v12 = vsub.f32 %v221_v1, %v232_v10  ;;  %v235_v13 = vsub.f32 %v222_v2, %v232_v10  ;;  %v236_v14 = vsub.f32 %v223_v3, %v232_v10  ;;  %s589_s4 = scalar_lea.vmem %s588_s30, 64  ;;  %p590_p5 = scmp.lt.s32.totalorder %s839_s28, %s588_s30 }
  0x44   : > { %v258_v42 = vsel %vm225_vm0, %v222_v2, 0.0  ;;  %v274_v43 = vadd.f32 %v273_v39, %v272_v38  ;;  %v275_v44 = vsel %vm225_vm0, %v269_v40, 0.0  ;;  %v260_v47 = vsel %vm225_vm0, %v223_v3, 0.0  ;;  %p585_p0 = pnand %p584_p8, %p742_p9  ;;  %p591_p6 = scmp.lt.s32.totalorder %s589_s4, %s583_s16 }
  0x45   : > { %v237_v15 = vmul.f32 1.442695, %v233_v11  ;;  %v239_v16 = vmul.f32 1.442695, %v234_v12  ;;  %v241_v17 = vmul.f32 1.442695, %v235_v13  ;;  %v259_v45 = vadd.f32 %v258_v42, %v257_v41 }
  0x46   : > { %v243_v18 = vmul.f32 1.442695, %v236_v14  ;;  %v276_v49 = vadd.f32 %v275_v44, %v274_v43  ;;  %vm277_vm5 = vcmp.ne.s32.totalorder %v224_v25, 4294967196  ;;  %p586_p2 = pneg %p585_p0  ;;  %p592_p4 = por %p591_p6, %p590_p5 }
  0x47   : > { %517 = vpow2.f32 %v237_v15  ;;  %v261_v51 = vadd.f32 %v260_v47, %v259_v45 }
  0x48   : > { %519 = vpow2.f32 %v239_v16  ;;  %p593_p7 = pnand %p592_p4, %p586_p2 }
  0x49   : > { %521 = vpow2.f32 %v241_v17 }
  0x4a   : > { %523 = vpow2.f32 %v243_v18 }
  0x54   : > { %v518_v19 = vpop.eup %517 }
  0x55   : > { %v520_v20 = vpop.eup %519  ;;  %v245_v21 = vsel %vm225_vm0, %v518_v19, 0.0 }
  0x56   : > { %v522_v22 = vpop.eup %521  ;;  %v246_v23 = vsel %vm225_vm0, %v520_v20, 0.0 }
  0x57   : > { %v524_v24 = vpop.eup %523  ;;  %v247_v26 = vadd.f32 %v246_v23, %v245_v21  ;;  %v248_v27 = vsel %vm225_vm0, %v522_v22, 0.0 }
  0x58   : > { %v250_v28 = vsel %vm225_vm0, %v524_v24, 0.0 }
  0x59   : > { %v249_v29 = vadd.f32 %v248_v27, %v247_v26 }
  0x5b   : > { %v251_v30 = vadd.f32 %v250_v28, %v249_v29 }
  0x5d   : > { %525 = vlog2.f32 %v251_v30 }
  0x6a   : > { %v526_v46 = vpop.eup %525 }
  0x6b   : > { %v253_v48 = vmul.f32 0.6931472, %v526_v46 }
  0x6d   : > { %v254_v50 = vadd.f32 %v253_v48, %v232_v10 }
  0x6f   : > { %v278_v52 = vsub.f32 %v254_v50, %v276_v49  ;;  %v280_v53 = vmul.f32 4.0, %v254_v50 }
  0x71   : > { %v279_v54 = vsel %vm277_vm5, %v278_v52, 0.0  ;;  %v281_v55 = vsub.f32 %v280_v53, %v261_v51 }
  0x72   : > { %v283_v56 = vsel %vm225_vm0, %v279_v54, 0.0 }
  0x73   : > { %v284_v57 = vrot.slane %v283_v56, 4  ;;  %v282_v58 = vsel %vm277_vm5, %v281_v55, 0.0 }
  0x74   : > { %v291_v59 = vsel %vm225_vm0, %v282_v58, 0.0 }
  0x75   : > { %v285_v60 = vadd.f32 %v284_v57, %v283_v56  ;;  %v292_v61 = vrot.slane %v291_v59, 4 }
  0x77   : > { %v286_v62 = vrot.slane %v285_v60, 2  ;;  %v293_v63 = vadd.f32 %v292_v61, %v291_v59 }
  0x79   : > { %v287_v0 = vadd.f32 %v286_v62, %v285_v60  ;;  %v294_v1 = vrot.slane %v293_v63, 2 }
  0x7b   : > { %v288_v2 = vrot.slane %v287_v0, 1  ;;  %v295_v3 = vadd.f32 %v294_v1, %v293_v63 }
  0x7d   : > { %v289_v4 = vadd.f32 %v288_v2, %v287_v0  ;;  %v296_v5 = vrot.slane %v295_v3, 1 }
  0x7f   : > { %299 = vst [vmem:[%s218_s21] sm:$0x1] %v289_v4  ;;  %v297_v6 = vadd.f32 %v296_v5, %v295_v3 }
  0x81   : > { %438 = vst [vmem:[%s218_s21 + $0x1] sm:$0x1] %v297_v6 }
  0x82   : > { %596 = shalt.err (!%p593_p7)
}
  0x83   : > { %s597_s6 = scalar_lea.hbm %s844_s8, 32  ;;  %s601_s20 = scalar_lea.hbm %s894_s2, 64 }
  0x84   : > { %p598_p1 = scmp.ne.s32.totalorder %s844_s8, %s597_s6  ;;  %p602_p3 = scmp.lt.s32.totalorder %s844_s8, %s894_s2 }
  0x85   : > { %p603_p8 = scmp.lt.s32.totalorder %s601_s20, %s597_s6 }
  0x86   : > { %p599_p10 = pnand %p598_p1, %p742_p9 }
  0x87   : > { %p604_p0 = por %p603_p8, %p602_p3 }
  0x88   : > { %p600_p13 = pneg %p599_p10 }
  0x8a   : > { %p605_p2 = pnand %p604_p0, %p600_p13 }
  0x8c   : > { %608 = shalt.err (!%p605_p2)
}
  0x8d   : > { %s674_s27 = smov 16   ;;  %s675_s21 = smov 1  }
  0x8e   : > { %450 = dma.vmem_to_hbm [thread:$0]  (%p742_p9), %s839_s28, 32, %s844_s8, %s303_s15, %s674_s27, %s674_s27, %s675_s21  }
  0x8f PF: > { %s332_s29 = sand.u32 1, %s647_s9   ;;  %p460_p5 = pnand %p428_p12, %p749_p11 }
  0x90   : > { %s333_s3 = scalar_lea.sflag [#allocation4], %s332_s29 }
  0x91   : > { %p461_p6 = pneg %p460_p5 }
  0x93   : > { %642 = dma.done.wait (%p461_p6), %s333_s3, 32  }
  0x94   : > { %644 = vsyncadd (%p461_p6), %s333_s3, 4294967264  ;;  %s21_s14 = sadd.s32 1, %s667_s14   ;;  %s901_s9 = smov %s651_s10 }
  0x95   : > { %p18_p4 = scmp.ge.s32.totalorder %s21_s14, 4   ;;  %s902_s10 = smov %s655_s11 }
  0x96   : > { %s903_s11 = smov %s747_s23  ;;  %s904_s12 = smov %s663_s13 }
  0x97   : > { %s905_s13 = smov %s907_s17  ;;  %20 = sbr.rel (!%p18_p4) target bundleno = 8 (0x8), region = 87 }
  0x9c   :  { %338 = vsyncpa [#allocation3], 1 }
  0x9d   :  { %340 = vsyncpa [#allocation3 + $0x1], 1 }
  0x9e   :  { %341 = vsyncpa [#allocation6], 1 }
  0x9f   :  { %343 = vsyncpa [#allocation6 + $0x1], 1 }
  0xa0   :  { %344 = vsyncpa [#allocation4], 1 }
  0xa1   :  { %346 = vsyncpa [#allocation4 + $0x1], 1 }

</bundles_post_ra>
